<compile_context>
chip_gen: v7x
topology: tpu7x:2x2x1
jax: 0.10.0
libtpu: 0.0.40
codegen_flags: <defaults>
</compile_context>

<pallas_src>
import functools

import jax
import jax.numpy as jnp
from jax.experimental import pallas as pl
from jax.experimental.pallas import tpu as pltpu

LN_EPS = 1e-12                 # transformers BertConfig.layer_norm_eps default
_INV_SQRT2 = 0.7071067811865476

# Minimum sublane tile (second-to-last dim) per element size.
_MIN_SUBLANES = {4: 8, 2: 16, 1: 32}


def _round_up(n, m):
    return ((n + m - 1) // m) * m


def _gelu_erf(x):
    # Exact (erf) GELU, matching torch.nn.functional.gelu default.
    return 0.5 * x * (1.0 + jax.lax.erf(x * _INV_SQRT2))


def bert_fcn_kernel(x_ref, w1_ref, b1_ref, w2_ref, b2_ref, gamma_ref, beta_ref,
                    o_ref):
    x_in = x_ref[...]                               # (tm, H), native dtype
    x_f32 = x_in.astype(jnp.float32)                # f32 copy for residual / LN
    mm_dtype = w1_ref.dtype                         # bf16 (or native) MXU operands
    x_mm = x_in if x_in.dtype == mm_dtype else x_in.astype(mm_dtype)

    # BertIntermediate: dense -> GELU (bf16 x bf16 -> f32 accumulate on MXU)
    h = jnp.dot(x_mm, w1_ref[...], preferred_element_type=jnp.float32)  # (tm, I)
    h = _gelu_erf(h + b1_ref[...].astype(jnp.float32))

    # BertOutput: dense -> (dropout = identity) -> residual add -> LayerNorm
    y = jnp.dot(h.astype(mm_dtype), w2_ref[...],
                preferred_element_type=jnp.float32)                      # (tm, H)
    y = y + b2_ref[...].astype(jnp.float32) + x_f32

    # Single-pass LayerNorm statistics: two independent cross-lane reductions.
    inv_h = 1.0 / y.shape[-1]
    s1 = jnp.sum(y, axis=-1, keepdims=True)
    s2 = jnp.sum(y * y, axis=-1, keepdims=True)
    mean = s1 * inv_h
    var = jnp.maximum(s2 * inv_h - mean * mean, 0.0)
    norm = (y - mean) * jax.lax.rsqrt(var + LN_EPS)
    out = (norm * gamma_ref[...].astype(jnp.float32)
           + beta_ref[...].astype(jnp.float32))

    o_ref[...] = out.astype(o_ref.dtype)


def _make_fcn_call(M_pad, H, I, tm, out_dtype, single_buffer_params,
                   vmem_limit, cost):
    def const_spec(shape):
        # Grid-invariant operand: fetched once, resident in VMEM across the grid.
        idx = lambda i: (0,) * len(shape)
        if single_buffer_params:
            return pl.BlockSpec(shape, idx, pipeline_mode=pl.Buffered(1))
        return pl.BlockSpec(shape, idx)

    return pl.pallas_call(
        bert_fcn_kernel,
        out_shape=jax.ShapeDtypeStruct((M_pad, H), out_dtype),
        grid_spec=pltpu.PrefetchScalarGridSpec(
            num_scalar_prefetch=0,
            grid=(M_pad // tm,),
            in_specs=[
                pl.BlockSpec((tm, H), lambda i: (i, 0)),   # x rows (pipelined)
                const_spec((H, I)),                        # W1 (resident)
                const_spec((1, I)),                        # b1
                const_spec((I, H)),                        # W2 (resident)
                const_spec((1, H)),                        # b2
                const_spec((1, H)),                        # LN gamma
                const_spec((1, H)),                        # LN beta
            ],
            out_specs=pl.BlockSpec((tm, H), lambda i: (i, 0)),
        ),
        compiler_params=pltpu.CompilerParams(
            dimension_semantics=("parallel",),
            vmem_limit_bytes=vmem_limit,
        ),
        cost_estimate=cost,
    )


@functools.partial(
    jax.jit, static_argnames=("tm", "mm_dtype", "single_buffer_params"))
def bert_fcn_forward(x, w1, b1, w2, b2, gamma, beta, *, tm=512,
                     mm_dtype=jnp.bfloat16, single_buffer_params=True):
    """x: [B, S, H]; w1: [H, I]; b1: [I]; w2: [I, H]; b2, gamma, beta: [H]."""
    B, S, H = x.shape
    I = w1.shape[1]
    M = B * S

    x_itemsize = jnp.dtype(x.dtype).itemsize
    mm_dt = jnp.dtype(mm_dtype)
    min_rows = _MIN_SUBLANES.get(x_itemsize, 8)
    n_param_buf = 1 if single_buffer_params else 2

    # Row tile: multiple of the sublane minimum, capped by the padded row count.
    tm_eff = max(min_rows,
                 (min(tm, _round_up(M, min_rows)) // min_rows) * min_rows)
    # If a single tile would cover all rows but there are enough rows for two,
    # split so both TensorCores (v7x megacore) get a grid step.
    if tm_eff >= M and M >= 2 * min_rows:
        tm_eff = _round_up(-(-M // 2), min_rows)

    def _resident_bytes(t):
        w = (H * I + I * H) * mm_dt.itemsize * n_param_buf          # weights
        vec = (I + 3 * H) * 4 * n_param_buf                         # biases / LN
        tiles = 2 * t * H * x_itemsize * 2                          # in+out, 2-buf
        inter = t * I * (4 + mm_dt.itemsize) + 6 * t * H * 4        # live temps
        return w + vec + tiles + inter

    # Keep per-step residency under a conservative per-core budget (v7x: 64 MiB/TC).
    while tm_eff > min_rows and _resident_bytes(tm_eff) > (48 << 20):
        tm_eff = max(min_rows, _round_up(tm_eff // 2, min_rows))

    M_pad = _round_up(M, tm_eff)

    x2d = x.reshape(M, H)
    if M_pad != M:
        x2d = jnp.pad(x2d, ((0, M_pad - M), (0, 0)))

    w1_mm = w1.astype(mm_dt)
    w2_mm = w2.astype(mm_dt)
    b1_2d = b1.reshape(1, I).astype(jnp.float32)
    b2_2d = b2.reshape(1, H).astype(jnp.float32)
    gamma_2d = gamma.reshape(1, H).astype(jnp.float32)
    beta_2d = beta.reshape(1, H).astype(jnp.float32)

    vmem_limit = int(_resident_bytes(tm_eff) + (4 << 20))
    vmem_limit = max(16 << 20, min(vmem_limit, 64 << 20))

    cost = pl.CostEstimate(
        flops=4 * M_pad * H * I + 12 * M_pad * H,
        transcendentals=M_pad * I,                         # erf in the GELU
        bytes_accessed=(2 * M_pad * H * x_itemsize
                        + (H * I + I * H) * mm_dt.itemsize
                        + (I + 3 * H) * 4),
    )

    out2d = _make_fcn_call(M_pad, H, I, tm_eff, x.dtype, single_buffer_params,
                           vmem_limit, cost)(
        x2d, w1_mm, b1_2d, w2_mm, b2_2d, gamma_2d, beta_2d)

    return (out2d[:M].reshape(B, S, H),)  # mirror the PyTorch tuple output


def _reference(x, w1, b1, w2, b2, gamma, beta, mm_dtype=jnp.bfloat16):
    """Pure-JAX reference using the same bf16-operand / f32-accumulate matmuls."""
    B, S, H = x.shape
    xf = x.reshape(-1, H).astype(jnp.float32)
    h = jnp.dot(xf.astype(mm_dtype), w1.astype(mm_dtype),
                preferred_element_type=jnp.float32)
    h = _gelu_erf(h + b1.astype(jnp.float32))
    y = jnp.dot(h.astype(mm_dtype), w2.astype(mm_dtype),
                preferred_element_type=jnp.float32)
    y = y + b2.astype(jnp.float32) + xf
    mean = jnp.mean(y, axis=-1, keepdims=True)
    var = jnp.mean((y - mean) ** 2, axis=-1, keepdims=True)
    out = (y - mean) * jax.lax.rsqrt(var + LN_EPS) * gamma + beta
    return out.reshape(B, S, H)


if __name__ == "__main__":
    # Small BERT-like config: hidden=128, intermediate=4*hidden=512.
    B, S, H = 2, 8, 128
    I = 4 * H

    key = jax.random.PRNGKey(0)
    kx, kw1, kb1, kw2, kb2 = jax.random.split(key, 5)

    x = jax.random.normal(kx, (B, S, H), dtype=jnp.float32)
    # Deterministic parameter init (synthetic; shapes follow nn.Linear/LayerNorm).
    w1 = jax.random.normal(kw1, (H, I), dtype=jnp.float32) * 0.02  # intermediate.dense.weight^T
    b1 = jax.random.normal(kb1, (I,), dtype=jnp.float32) * 0.02    # intermediate.dense.bias
    w2 = jax.random.normal(kw2, (I, H), dtype=jnp.float32) * 0.02  # output.dense.weight^T
    b2 = jax.random.normal(kb2, (H,), dtype=jnp.float32) * 0.02    # output.dense.bias
    gamma = jnp.ones((H,), dtype=jnp.float32)                      # output.LayerNorm.weight
    beta = jnp.zeros((H,), dtype=jnp.float32)                      # output.LayerNorm.bias

    try:
        (out,) = bert_fcn_forward(x, w1, b1, w2, b2, gamma, beta)
        out = jax.block_until_ready(out)
    except Exception:
        # Fallback in case this jax build rejects single-buffer pipeline_mode.
        (out,) = bert_fcn_forward(x, w1, b1, w2, b2, gamma, beta,
                                  single_buffer_params=False)
        out = jax.block_until_ready(out)

    ref = _reference(x, w1, b1, w2, b2, gamma, beta, mm_dtype=jnp.bfloat16)
    assert out.shape == (B, S, H)
    assert jnp.allclose(out, ref, atol=2e-2, rtol=2e-2), "mismatch vs reference"

    # TODO(synk): dropout inside BertOutput is omitted (identity), matching eval mode.
    print("KERNEL_OK")
</pallas_src>

<mosaic_0001>
module attributes {stable_mosaic.version = 11 : i64} {
  func.func @bert_fcn_kernel(%arg0: i32, %arg1: memref<8x128xf32, #tpu.memory_space<vmem>>, %arg2: memref<128x512xbf16, #tpu.memory_space<vmem>>, %arg3: memref<1x512xf32, #tpu.memory_space<vmem>>, %arg4: memref<512x128xbf16, #tpu.memory_space<vmem>>, %arg5: memref<1x128xf32, #tpu.memory_space<vmem>>, %arg6: memref<1x128xf32, #tpu.memory_space<vmem>>, %arg7: memref<1x128xf32, #tpu.memory_space<vmem>>, %arg8: memref<8x128xf32, #tpu.memory_space<vmem>>) attributes {dimension_semantics = [#tpu.dimension_semantics<parallel>], iteration_bounds = array<i64: 2>, scalar_prefetch = 0 : i64, scratch_operands = 0 : i64, tpu.core_type = #tpu.core_type<tc>, window_params = [{transform_indices = @transform_0, window_bounds = array<i64: 8, 128>}, {pipeline_mode = #tpu.pipeline_mode<synchronous>, transform_indices = @transform_1, window_bounds = array<i64: 128, 512>}, {pipeline_mode = #tpu.pipeline_mode<synchronous>, transform_indices = @transform_2, window_bounds = array<i64: 1, 512>}, {pipeline_mode = #tpu.pipeline_mode<synchronous>, transform_indices = @transform_3, window_bounds = array<i64: 512, 128>}, {pipeline_mode = #tpu.pipeline_mode<synchronous>, transform_indices = @transform_4, window_bounds = array<i64: 1, 128>}, {pipeline_mode = #tpu.pipeline_mode<synchronous>, transform_indices = @transform_5, window_bounds = array<i64: 1, 128>}, {pipeline_mode = #tpu.pipeline_mode<synchronous>, transform_indices = @transform_6, window_bounds = array<i64: 1, 128>}, {transform_indices = @transform_7, window_bounds = array<i64: 8, 128>}]} {
    %c0 = arith.constant 0 : index
    %c0_0 = arith.constant 0 : index
    %0 = vector.load %arg1[%c0, %c0_0] : memref<8x128xf32, #tpu.memory_space<vmem>>, vector<8x128xf32>
    %1 = arith.truncf %0 : vector<8x128xf32> to vector<8x128xbf16>
    %c0_1 = arith.constant 0 : index
    %c0_2 = arith.constant 0 : index
    %2 = vector.load %arg2[%c0_1, %c0_2] : memref<128x512xbf16, #tpu.memory_space<vmem>>, vector<128x512xbf16>
    %cst = arith.constant dense<0.000000e+00> : vector<8x512xf32>
    %3 = tpu.matmul %1, %2, %cst {dimension_numbers = #tpu.dot_dimension_numbers<[1], [0], [0], [1], [0, 0, 1, 1], [], []>} : vector<8x128xbf16>, vector<128x512xbf16>, vector<8x512xf32> -> vector<8x512xf32>
    %c0_3 = arith.constant 0 : index
    %c0_4 = arith.constant 0 : index
    %4 = vector.load %arg3[%c0_3, %c0_4] : memref<1x512xf32, #tpu.memory_space<vmem>>, vector<1x512xf32>
    %5 = vector.broadcast %4 : vector<1x512xf32> to vector<8x512xf32>
    %6 = arith.addf %3, %5 : vector<8x512xf32>
    %cst_5 = arith.constant 5.000000e-01 : f32
    %7 = vector.broadcast %cst_5 : f32 to vector<8x512xf32>
    %8 = arith.mulf %7, %6 : vector<8x512xf32>
    %cst_6 = arith.constant 0.707106769 : f32
    %9 = vector.broadcast %cst_6 : f32 to vector<8x512xf32>
    %10 = arith.mulf %6, %9 : vector<8x512xf32>
    %11 = math.erf %10 : vector<8x512xf32>
    %cst_7 = arith.constant 1.000000e+00 : f32
    %12 = vector.broadcast %cst_7 : f32 to vector<8x512xf32>
    %13 = arith.addf %12, %11 : vector<8x512xf32>
    %14 = arith.mulf %8, %13 : vector<8x512xf32>
    %15 = arith.truncf %14 : vector<8x512xf32> to vector<8x512xbf16>
    %c0_8 = arith.constant 0 : index
    %c0_9 = arith.constant 0 : index
    %16 = vector.load %arg4[%c0_8, %c0_9] : memref<512x128xbf16, #tpu.memory_space<vmem>>, vector<512x128xbf16>
    %cst_10 = arith.constant dense<0.000000e+00> : vector<8x128xf32>
    %17 = tpu.matmul %15, %16, %cst_10 {dimension_numbers = #tpu.dot_dimension_numbers<[1], [0], [0], [1], [0, 0, 1, 1], [], []>} : vector<8x512xbf16>, vector<512x128xbf16>, vector<8x128xf32> -> vector<8x128xf32>
    %c0_11 = arith.constant 0 : index
    %c0_12 = arith.constant 0 : index
    %18 = vector.load %arg5[%c0_11, %c0_12] : memref<1x128xf32, #tpu.memory_space<vmem>>, vector<1x128xf32>
    %19 = vector.broadcast %18 : vector<1x128xf32> to vector<8x128xf32>
    %20 = arith.addf %17, %19 : vector<8x128xf32>
    %21 = arith.addf %20, %0 : vector<8x128xf32>
    %cst_13 = arith.constant dense<0.000000e+00> : vector<8xf32>
    %22 = vector.multi_reduction <add>, %21, %cst_13 [1] : vector<8x128xf32> to vector<8xf32>
    %23 = vector.shape_cast %22 : vector<8xf32> to vector<8x1xf32>
    %24 = arith.mulf %21, %21 : vector<8x128xf32>
    %cst_14 = arith.constant dense<0.000000e+00> : vector<8xf32>
    %25 = vector.multi_reduction <add>, %24, %cst_14 [1] : vector<8x128xf32> to vector<8xf32>
    %26 = vector.shape_cast %25 : vector<8xf32> to vector<8x1xf32>
    %cst_15 = arith.constant 7.812500e-03 : f32
    %27 = vector.broadcast %cst_15 : f32 to vector<8x1xf32>
    %28 = arith.mulf %23, %27 : vector<8x1xf32>
    %cst_16 = arith.constant 7.812500e-03 : f32
    %29 = vector.broadcast %cst_16 : f32 to vector<8x1xf32>
    %30 = arith.mulf %26, %29 : vector<8x1xf32>
    %31 = arith.mulf %28, %28 : vector<8x1xf32>
    %32 = arith.subf %30, %31 : vector<8x1xf32>
    %cst_17 = arith.constant 0.000000e+00 : f32
    %33 = vector.broadcast %cst_17 : f32 to vector<8x1xf32>
    %34 = arith.maximumf %32, %33 : vector<8x1xf32>
    %35 = vector.broadcast %28 : vector<8x1xf32> to vector<8x128xf32>
    %36 = arith.subf %21, %35 : vector<8x128xf32>
    %cst_18 = arith.constant 9.99999996E-13 : f32
    %37 = vector.broadcast %cst_18 : f32 to vector<8x1xf32>
    %38 = arith.addf %34, %37 : vector<8x1xf32>
    %39 = math.rsqrt %38 : vector<8x1xf32>
    %40 = vector.broadcast %39 : vector<8x1xf32> to vector<8x128xf32>
    %41 = arith.mulf %36, %40 : vector<8x128xf32>
    %c0_19 = arith.constant 0 : index
    %c0_20 = arith.constant 0 : index
    %42 = vector.load %arg6[%c0_19, %c0_20] : memref<1x128xf32, #tpu.memory_space<vmem>>, vector<1x128xf32>
    %43 = vector.broadcast %42 : vector<1x128xf32> to vector<8x128xf32>
    %44 = arith.mulf %41, %43 : vector<8x128xf32>
    %c0_21 = arith.constant 0 : index
    %c0_22 = arith.constant 0 : index
    %45 = vector.load %arg7[%c0_21, %c0_22] : memref<1x128xf32, #tpu.memory_space<vmem>>, vector<1x128xf32>
    %46 = vector.broadcast %45 : vector<1x128xf32> to vector<8x128xf32>
    %47 = arith.addf %44, %46 : vector<8x128xf32>
    %c0_23 = arith.constant 0 : index
    %c0_24 = arith.constant 0 : index
    %48 = vector.load %arg8[%c0_23, %c0_24] : memref<8x128xf32, #tpu.memory_space<vmem>>, vector<8x128xf32>
    tpu.vector_store %arg8[%c0_23, %c0_24], %47 {strides = array<i32>} : memref<8x128xf32, #tpu.memory_space<vmem>>, vector<8x128xf32>,
    return
  }
  func.func @transform_0(%arg0: i32) -> (i32, i32) {
    %c0_i32 = arith.constant 0 : i32
    %c0_i32_0 = arith.constant 0 : i32
    return %arg0, %c0_i32 : i32, i32
  }
  func.func @transform_1(%arg0: i32) -> (i32, i32) {
    %c0_i32 = arith.constant 0 : i32
    %c0_i32_0 = arith.constant 0 : i32
    %c0_i32_1 = arith.constant 0 : i32
    return %c0_i32, %c0_i32_0 : i32, i32
  }
  func.func @transform_2(%arg0: i32) -> (i32, i32) {
    %c0_i32 = arith.constant 0 : i32
    %c0_i32_0 = arith.constant 0 : i32
    %c0_i32_1 = arith.constant 0 : i32
    return %c0_i32, %c0_i32_0 : i32, i32
  }
  func.func @transform_3(%arg0: i32) -> (i32, i32) {
    %c0_i32 = arith.constant 0 : i32
    %c0_i32_0 = arith.constant 0 : i32
    %c0_i32_1 = arith.constant 0 : i32
    return %c0_i32, %c0_i32_0 : i32, i32
  }
  func.func @transform_4(%arg0: i32) -> (i32, i32) {
    %c0_i32 = arith.constant 0 : i32
    %c0_i32_0 = arith.constant 0 : i32
    %c0_i32_1 = arith.constant 0 : i32
    return %c0_i32, %c0_i32_0 : i32, i32
  }
  func.func @transform_5(%arg0: i32) -> (i32, i32) {
    %c0_i32 = arith.constant 0 : i32
    %c0_i32_0 = arith.constant 0 : i32
    %c0_i32_1 = arith.constant 0 : i32
    return %c0_i32, %c0_i32_0 : i32, i32
  }
  func.func @transform_6(%arg0: i32) -> (i32, i32) {
    %c0_i32 = arith.constant 0 : i32
    %c0_i32_0 = arith.constant 0 : i32
    %c0_i32_1 = arith.constant 0 : i32
    return %c0_i32, %c0_i32_0 : i32, i32
  }
  func.func @transform_7(%arg0: i32) -> (i32, i32) {
    %c0_i32 = arith.constant 0 : i32
    %c0_i32_0 = arith.constant 0 : i32
    return %arg0, %c0_i32 : i32, i32
  }
}

module attributes {stable_mosaic.version = 11 : i64} {
  func.func @bert_fcn_kernel(%arg0: i32, %arg1: memref<8x128xf32, #tpu.memory_space<vmem>>, %arg2: memref<128x512xbf16, #tpu.memory_space<vmem>>, %arg3: memref<1x512xf32, #tpu.memory_space<vmem>>, %arg4: memref<512x128xbf16, #tpu.memory_space<vmem>>, %arg5: memref<1x128xf32, #tpu.memory_space<vmem>>, %arg6: memref<1x128xf32, #tpu.memory_space<vmem>>, %arg7: memref<1x128xf32, #tpu.memory_space<vmem>>, %arg8: memref<8x128xf32, #tpu.memory_space<vmem>>) attributes {dimension_semantics = [#tpu.dimension_semantics<parallel>], iteration_bounds = array<i64: 2>, scalar_prefetch = 0 : i64, scratch_operands = 0 : i64, tpu.core_type = #tpu.core_type<tc>, window_params = [{transform_indices = @transform_0, window_bounds = array<i64: 8, 128>}, {pipeline_mode = #tpu.pipeline_mode<synchronous>, transform_indices = @transform_1, window_bounds = array<i64: 128, 512>}, {pipeline_mode = #tpu.pipeline_mode<synchronous>, transform_indices = @transform_2, window_bounds = array<i64: 1, 512>}, {pipeline_mode = #tpu.pipeline_mode<synchronous>, transform_indices = @transform_3, window_bounds = array<i64: 512, 128>}, {pipeline_mode = #tpu.pipeline_mode<synchronous>, transform_indices = @transform_4, window_bounds = array<i64: 1, 128>}, {pipeline_mode = #tpu.pipeline_mode<synchronous>, transform_indices = @transform_5, window_bounds = array<i64: 1, 128>}, {pipeline_mode = #tpu.pipeline_mode<synchronous>, transform_indices = @transform_6, window_bounds = array<i64: 1, 128>}, {transform_indices = @transform_7, window_bounds = array<i64: 8, 128>}]} {
    %c0 = arith.constant 0 : index
    %c0_0 = arith.constant 0 : index
    %0 = vector.load %arg1[%c0, %c0_0] : memref<8x128xf32, #tpu.memory_space<vmem>>, vector<8x128xf32>
    %1 = arith.truncf %0 : vector<8x128xf32> to vector<8x128xbf16>
    %c0_1 = arith.constant 0 : index
    %c0_2 = arith.constant 0 : index
    %2 = vector.load %arg2[%c0_1, %c0_2] : memref<128x512xbf16, #tpu.memory_space<vmem>>, vector<128x512xbf16>
    %cst = arith.constant dense<0.000000e+00> : vector<8x512xf32>
    %3 = tpu.matmul %1, %2, %cst {dimension_numbers = #tpu.dot_dimension_numbers<[1], [0], [0], [1], [0, 0, 1, 1], [], []>} : vector<8x128xbf16>, vector<128x512xbf16>, vector<8x512xf32> -> vector<8x512xf32>
    %c0_3 = arith.constant 0 : index
    %c0_4 = arith.constant 0 : index
    %4 = vector.load %arg3[%c0_3, %c0_4] : memref<1x512xf32, #tpu.memory_space<vmem>>, vector<1x512xf32>
    %5 = vector.broadcast %4 : vector<1x512xf32> to vector<8x512xf32>
    %6 = arith.addf %3, %5 : vector<8x512xf32>
    %cst_5 = arith.constant 5.000000e-01 : f32
    %7 = vector.broadcast %cst_5 : f32 to vector<8x512xf32>
    %8 = arith.mulf %7, %6 : vector<8x512xf32>
    %cst_6 = arith.constant 0.707106769 : f32
    %9 = vector.broadcast %cst_6 : f32 to vector<8x512xf32>
    %10 = arith.mulf %6, %9 : vector<8x512xf32>
    %11 = math.erf %10 : vector<8x512xf32>
    %cst_7 = arith.constant 1.000000e+00 : f32
    %12 = vector.broadcast %cst_7 : f32 to vector<8x512xf32>
    %13 = arith.addf %12, %11 : vector<8x512xf32>
    %14 = arith.mulf %8, %13 : vector<8x512xf32>
    %15 = arith.truncf %14 : vector<8x512xf32> to vector<8x512xbf16>
    %c0_8 = arith.constant 0 : index
    %c0_9 = arith.constant 0 : index
    %16 = vector.load %arg4[%c0_8, %c0_9] : memref<512x128xbf16, #tpu.memory_space<vmem>>, vector<512x128xbf16>
    %cst_10 = arith.constant dense<0.000000e+00> : vector<8x128xf32>
    %17 = tpu.matmul %15, %16, %cst_10 {dimension_numbers = #tpu.dot_dimension_numbers<[1], [0], [0], [1], [0, 0, 1, 1], [], []>} : vector<8x512xbf16>, vector<512x128xbf16>, vector<8x128xf32> -> vector<8x128xf32>
    %c0_11 = arith.constant 0 : index
    %c0_12 = arith.constant 0 : index
    %18 = vector.load %arg5[%c0_11, %c0_12] : memref<1x128xf32, #tpu.memory_space<vmem>>, vector<1x128xf32>
    %19 = vector.broadcast %18 : vector<1x128xf32> to vector<8x128xf32>
    %20 = arith.addf %17, %19 : vector<8x128xf32>
    %21 = arith.addf %20, %0 : vector<8x128xf32>
    %cst_13 = arith.constant dense<0.000000e+00> : vector<8xf32>
    %22 = vector.multi_reduction <add>, %21, %cst_13 [1] : vector<8x128xf32> to vector<8xf32>
    %23 = vector.shape_cast %22 : vector<8xf32> to vector<8x1xf32>
    %24 = arith.mulf %21, %21 : vector<8x128xf32>
    %cst_14 = arith.constant dense<0.000000e+00> : vector<8xf32>
    %25 = vector.multi_reduction <add>, %24, %cst_14 [1] : vector<8x128xf32> to vector<8xf32>
    %26 = vector.shape_cast %25 : vector<8xf32> to vector<8x1xf32>
    %cst_15 = arith.constant 7.812500e-03 : f32
    %27 = vector.broadcast %cst_15 : f32 to vector<8x1xf32>
    %28 = arith.mulf %23, %27 : vector<8x1xf32>
    %cst_16 = arith.constant 7.812500e-03 : f32
    %29 = vector.broadcast %cst_16 : f32 to vector<8x1xf32>
    %30 = arith.mulf %26, %29 : vector<8x1xf32>
    %31 = arith.mulf %28, %28 : vector<8x1xf32>
    %32 = arith.subf %30, %31 : vector<8x1xf32>
    %cst_17 = arith.constant 0.000000e+00 : f32
    %33 = vector.broadcast %cst_17 : f32 to vector<8x1xf32>
    %34 = arith.maximumf %32, %33 : vector<8x1xf32>
    %35 = vector.broadcast %28 : vector<8x1xf32> to vector<8x128xf32>
    %36 = arith.subf %21, %35 : vector<8x128xf32>
    %cst_18 = arith.constant 9.99999996E-13 : f32
    %37 = vector.broadcast %cst_18 : f32 to vector<8x1xf32>
    %38 = arith.addf %34, %37 : vector<8x1xf32>
    %39 = math.rsqrt %38 : vector<8x1xf32>
    %40 = vector.broadcast %39 : vector<8x1xf32> to vector<8x128xf32>
    %41 = arith.mulf %36, %40 : vector<8x128xf32>
    %c0_19 = arith.constant 0 : index
    %c0_20 = arith.constant 0 : index
    %42 = vector.load %arg6[%c0_19, %c0_20] : memref<1x128xf32, #tpu.memory_space<vmem>>, vector<1x128xf32>
    %43 = vector.broadcast %42 : vector<1x128xf32> to vector<8x128xf32>
    %44 = arith.mulf %41, %43 : vector<8x128xf32>
    %c0_21 = arith.constant 0 : index
    %c0_22 = arith.constant 0 : index
    %45 = vector.load %arg7[%c0_21, %c0_22] : memref<1x128xf32, #tpu.memory_space<vmem>>, vector<1x128xf32>
    %46 = vector.broadcast %45 : vector<1x128xf32> to vector<8x128xf32>
    %47 = arith.addf %44, %46 : vector<8x128xf32>
    %c0_23 = arith.constant 0 : index
    %c0_24 = arith.constant 0 : index
    %48 = vector.load %arg8[%c0_23, %c0_24] : memref<8x128xf32, #tpu.memory_space<vmem>>, vector<8x128xf32>
    tpu.vector_store %arg8[%c0_23, %c0_24], %47 {strides = array<i32>} : memref<8x128xf32, #tpu.memory_space<vmem>>, vector<8x128xf32>,
    return
  }
  func.func @transform_0(%arg0: i32) -> (i32, i32) {
    %c0_i32 = arith.constant 0 : i32
    %c0_i32_0 = arith.constant 0 : i32
    return %arg0, %c0_i32 : i32, i32
  }
  func.func @transform_1(%arg0: i32) -> (i32, i32) {
    %c0_i32 = arith.constant 0 : i32
    %c0_i32_0 = arith.constant 0 : i32
    %c0_i32_1 = arith.constant 0 : i32
    return %c0_i32, %c0_i32_0 : i32, i32
  }
  func.func @transform_2(%arg0: i32) -> (i32, i32) {
    %c0_i32 = arith.constant 0 : i32
    %c0_i32_0 = arith.constant 0 : i32
    %c0_i32_1 = arith.constant 0 : i32
    return %c0_i32, %c0_i32_0 : i32, i32
  }
  func.func @transform_3(%arg0: i32) -> (i32, i32) {
    %c0_i32 = arith.constant 0 : i32
    %c0_i32_0 = arith.constant 0 : i32
    %c0_i32_1 = arith.constant 0 : i32
    return %c0_i32, %c0_i32_0 : i32, i32
  }
  func.func @transform_4(%arg0: i32) -> (i32, i32) {
    %c0_i32 = arith.constant 0 : i32
    %c0_i32_0 = arith.constant 0 : i32
    %c0_i32_1 = arith.constant 0 : i32
    return %c0_i32, %c0_i32_0 : i32, i32
  }
  func.func @transform_5(%arg0: i32) -> (i32, i32) {
    %c0_i32 = arith.constant 0 : i32
    %c0_i32_0 = arith.constant 0 : i32
    %c0_i32_1 = arith.constant 0 : i32
    return %c0_i32, %c0_i32_0 : i32, i32
  }
  func.func @transform_6(%arg0: i32) -> (i32, i32) {
    %c0_i32 = arith.constant 0 : i32
    %c0_i32_0 = arith.constant 0 : i32
    %c0_i32_1 = arith.constant 0 : i32
    return %c0_i32, %c0_i32_0 : i32, i32
  }
  func.func @transform_7(%arg0: i32) -> (i32, i32) {
    %c0_i32 = arith.constant 0 : i32
    %c0_i32_0 = arith.constant 0 : i32
    return %arg0, %c0_i32 : i32, i32
  }
}

</mosaic_0001>

<bundles_post_ra>
// kernel: bert_fcn_forward.1
= control target key start
LH: loop header
LB: loop body
LE: loop exit
PB: predicated region body
PF: predicated region fallthrough
CT: control target
= control target key end

     0   :  { %12 = vsyncpa [#allocation3], 0  ;;  %s1711_s0 = inlined_call_operand.vmem [shape: f32[16,128], index: 0, kind: input, shape index: {}]   ;;  %s1712_s1 = inlined_call_operand.vmem [shape: bf16[128,512], index: 1, kind: input, shape index: {}]   ;;  %s1713_s2 = inlined_call_operand.vmem [shape: f32[1,512], index: 2, kind: input, shape index: {}]   ;;  %s1714_s3 = inlined_call_operand.vmem [shape: bf16[512,128], index: 3, kind: input, shape index: {}]   ;;  %s1715_s4 = inlined_call_operand.vmem [shape: f32[1,128], index: 4, kind: input, shape index: {}]   ;;  %s1716_s5 = inlined_call_operand.vmem [shape: f32[1,128], index: 5, kind: input, shape index: {}]   ;;  %s1717_s6 = inlined_call_operand.vmem [shape: f32[1,128], index: 6, kind: input, shape index: {}]   ;;  %s1718_s7 = inlined_call_operand.hbm [shape: f32[16,128], index: 7, kind: output, shape index: {}]  }
   0x1   :  { %14 = vsyncpa [#allocation3 + $0x1], 0  ;;  %s1402_s24 = smov 0   ;;  %s1404_s25 = smov 0  }
   0x2   :  { %s1406_s26 = smov 0   ;;  %s1408_s27 = smov 0  }
   0x3 LB: > { %s1423_s28 = sadd.s32 4294967295, %s1358_s27   ;;  %s1045_s29 = sadd.s32 4294967294, %s1358_s27   ;;  %s1358_s27 = sphi %s1408_s27, %s1724_s27   ;;  %s1354_s26 = sphi %s1406_s26, %s1723_s26   ;;  %s1350_s25 = sphi %s1404_s25, %s1722_s25   ;;  %s1346_s24 = sphi %s1402_s24, %s1721_s24  }
   0x4   : > { %s1427_s30 = sadd.s32 1, %s1358_s27   ;;  %s179_s8 = sadd.s32 1, %s1354_s26 }
   0x5   : > { %s176_s9 = ssub.s32 %s1358_s27, %s1427_s30  ;;  %p189_p0 = scmp.ne.s32.totalorder %s1354_s26, %s1350_s25 }
   0x6   : > { %p177_p1 = scmp.eq.s32.totalorder %s176_s9, 0  ;;  %p190_p2 = scmp.eq.s32.totalorder %s1423_s28, 1 }
   0x7   : > { %p195_p3 = scmp.ne.s32.totalorder %s1350_s25, %s1346_s24  ;;  %p196_p4 = scmp.eq.s32.totalorder %s1045_s29, 1 }
   0x8   : > { %s1438_s10 = scalar_select %p177_p1, %s1354_s26, %s179_s8  }
   0x9   : > { %p1440_p5 = por %p190_p2, %p189_p0  ;;  %p1444_p6 = por %p196_p4, %p195_p3 }
   0xa   : > { %p1048_p7 = scmp.ge.s32.totalorder %s1358_s27, 1  ;;  %p239_p8 = scmp.lt.s32.totalorder %s1358_s27, 3 }
   0xc   : > { %p240_p9 = pnand %p1048_p7, %p239_p8 }
   0xd   : > { %v1206_v0 = vld [vmem:[%s1712_s1 + $0x4] ss:$16 sps:$4 sm:$0xff] (!%p240_p9)   ;;  %v1208_v1 = vld [vmem:[%s1712_s1 + $0xc] ss:$16 sps:$4 sm:$0xff] (!%p240_p9)   ;;  %v1360_v2 = vmov (!%p240_p9), 0   ;;  %p270_p10 = scmp.lt.s32.totalorder (!%p240_p9), %s1423_s28, 1 }
   0xe   : > { %243 = sbr.rel (%p240_p9) target bundleno = 689 (0x2b1), region = 48  ;;  %523 = vmatprep.mubr.bf16.mxu0 (!%p240_p9), %v1360_v2  ;;  %564 = vmatprep.mubr.bf16.mxu1 (!%p240_p9), %v1360_v2  ;;  %v1210_v3 = vld [vmem:[%s1712_s1] ss:$16 sps:$4 sm:$0xff] (!%p240_p9)   ;;  %v1211_v4 = vld [vmem:[%s1712_s1 + $0x8] ss:$16 sps:$4 sm:$0xff] (!%p240_p9)   ;;  %s267_s8 = sand.u32 (!%p240_p9), 1, %s1350_s25  }
   0xf   : > { %491 = vmatprep.subr.bf16.mxu0 (!%p240_p9), %v1206_v0  ;;  %532 = vmatprep.subr.bf16.mxu1 (!%p240_p9), %v1208_v1  ;;  %v1212_v5 = vld [vmem:[%s1712_s1 + $0x24] ss:$16 sps:$4 sm:$0xff] (!%p240_p9)   ;;  %v1214_v6 = vld [vmem:[%s1712_s1 + $0x2c] ss:$16 sps:$4 sm:$0xff] (!%p240_p9)   ;;  %v1216_v7 = vld [vmem:[%s1712_s1 + $0x20] ss:$16 sps:$4 sm:$0xff] (!%p240_p9)  }
  0x10   : > { %492 = vmatpush1.bf16.msra.mxu0 (!%p240_p9), %v1210_v3  ;;  %533 = vmatpush1.bf16.msra.mxu1 (!%p240_p9), %v1211_v4  ;;  %v1217_v8 = vld [vmem:[%s1712_s1 + $0x28] ss:$16 sps:$4 sm:$0xff] (!%p240_p9)   ;;  %v1218_v9 = vld [vmem:[%s1712_s1 + $0x44] ss:$16 sps:$4 sm:$0xff] (!%p240_p9)   ;;  %v1220_v10 = vld [vmem:[%s1712_s1 + $0x4c] ss:$16 sps:$4 sm:$0xff] (!%p240_p9)   ;;  %v311_v3 = vlaneseq (!%p240_p9) }
  0x11   : > { %493 = vmatprep.subr.bf16.mxu0 (!%p240_p9), %v1212_v5  ;;  %534 = vmatprep.subr.bf16.mxu1 (!%p240_p9), %v1214_v6  ;;  %v1222_v11 = vld [vmem:[%s1712_s1 + $0x40] ss:$16 sps:$4 sm:$0xff] (!%p240_p9)   ;;  %v1223_v12 = vld [vmem:[%s1712_s1 + $0x48] ss:$16 sps:$4 sm:$0xff] (!%p240_p9)   ;;  %v1224_v13 = vld [vmem:[%s1712_s1 + $0x64] ss:$16 sps:$4 sm:$0xff] (!%p240_p9)  }
  0x12   : > { %v1226_v14 = vld [vmem:[%s1712_s1 + $0x6c] ss:$16 sps:$4 sm:$0xff] (!%p240_p9)   ;;  %v1228_v15 = vld [vmem:[%s1712_s1 + $0x60] ss:$16 sps:$4 sm:$0xff] (!%p240_p9)   ;;  %v1229_v16 = vld [vmem:[%s1712_s1 + $0x68] ss:$16 sps:$4 sm:$0xff] (!%p240_p9)  }
  0x13   : > { %v1230_v17 = vld [vmem:[%s1712_s1 + $0x84] ss:$16 sps:$4 sm:$0xff] (!%p240_p9)   ;;  %v1232_v18 = vld [vmem:[%s1712_s1 + $0x8c] ss:$16 sps:$4 sm:$0xff] (!%p240_p9)   ;;  %v1234_v19 = vld [vmem:[%s1712_s1 + $0x80] ss:$16 sps:$4 sm:$0xff] (!%p240_p9)  }
  0x14   : > { %494 = vmatpush1.bf16.msra.mxu0 (!%p240_p9), %v1216_v7  ;;  %535 = vmatpush1.bf16.msra.mxu1 (!%p240_p9), %v1217_v8  ;;  %v1235_v20 = vld [vmem:[%s1712_s1 + $0x88] ss:$16 sps:$4 sm:$0xff] (!%p240_p9)   ;;  %v1236_v21 = vld [vmem:[%s1712_s1 + $0xa4] ss:$16 sps:$4 sm:$0xff] (!%p240_p9)   ;;  %v1238_v22 = vld [vmem:[%s1712_s1 + $0xac] ss:$16 sps:$4 sm:$0xff] (!%p240_p9)  }
  0x15   : > { %495 = vmatprep.subr.bf16.mxu0 %v1218_v9  ;;  %536 = vmatprep.subr.bf16.mxu1 %v1220_v10  ;;  %s271_s13 = scalar_select %p270_p10, %s1423_s28, 1  ;;  %v1240_v23 = vld [vmem:[%s1712_s1 + $0xa0] ss:$16 sps:$4 sm:$0xff]   ;;  %v1241_v24 = vld [vmem:[%s1712_s1 + $0xa8] ss:$16 sps:$4 sm:$0xff]   ;;  %v312_v4 = vshrl.u32 %v311_v3, 7 }
  0x16   : > { %v1242_v25 = vld [vmem:[%s1712_s1 + $0xc4] ss:$16 sps:$4 sm:$0xff]   ;;  %v1244_v26 = vld [vmem:[%s1712_s1 + $0xcc] ss:$16 sps:$4 sm:$0xff]   ;;  %v1246_v27 = vld [vmem:[%s1712_s1 + $0xc0] ss:$16 sps:$4 sm:$0xff]  }
  0x17   : > { %s1050_s20 = sshll.u32 %s271_s13, 3  ;;  %v1247_v28 = vld [vmem:[%s1712_s1 + $0xc8] ss:$16 sps:$4 sm:$0xff]   ;;  %v1248_v29 = vld [vmem:[%s1712_s1 + $0xe4] ss:$16 sps:$4 sm:$0xff]   ;;  %v313_v5 = vsub.s32 0, %v312_v4 }
  0x18   : > { %496 = vmatpush1.bf16.msra.mxu0 %v1222_v11  ;;  %537 = vmatpush1.bf16.msra.mxu1 %v1223_v12  ;;  %v1250_v30 = vld [vmem:[%s1712_s1 + $0xec] ss:$16 sps:$4 sm:$0xff]   ;;  %s273_s22 = scalar_lea.vmem %s1711_s0, %s1050_s20  ;;  %v1252_v31 = vld [vmem:[%s1712_s1 + $0xe0] ss:$16 sps:$4 sm:$0xff]   ;;  %v1253_v32 = vld [vmem:[%s1712_s1 + $0xe8] ss:$16 sps:$4 sm:$0xff]  }
  0x19   : > { %497 = vmatprep.subr.bf16.mxu0 %v1224_v13  ;;  %538 = vmatprep.subr.bf16.mxu1 %v1226_v14  ;;  %v1551_v33 = vld [vmem:[%s273_s22] sm:$0xff]  ;;  %v1258_v39 = vld [vmem:[%s1714_s3 + $0x48] sm:$0xff]   ;;  %v1262_v43 = vld [vmem:[%s1714_s3 + $0x50] sm:$0xff]   ;;  %v321_v6 = vsub.s32 2, %v312_v4  ;;  %v317_v8 = vsub.s32 1, %v312_v4  ;;  %v325_v9 = vsub.s32 3, %v312_v4 }
  0x1a   : > { %v1254_v34 = vld [vmem:[%s1714_s3 + $0x40] sm:$0xff]   ;;  %v276_v38 = vpack.c.bf16 %v1551_v33, %v1551_v33  ;;  %v1259_v40 = vld [vmem:[%s1714_s3 + $0xc8] sm:$0xff]   ;;  %v1263_v44 = vld [vmem:[%s1714_s3 + $0xd0] sm:$0xff]   ;;  %s1049_s9 = sshll.u32 %s267_s8, 3  ;;  %s1119_s16 = sshll.u32 %s1423_s28, 7 }
  0x1b   : > { %v1255_v35 = vld [vmem:[%s1714_s3 + $0xc0] sm:$0xff]   ;;  %v1260_v41 = vld [vmem:[%s1714_s3 + $0x8] sm:$0xff]   ;;  %v1264_v45 = vld [vmem:[%s1714_s3 + $0x10] sm:$0xff]   ;;  %s269_s17 = scalar_lea.vmem [#allocation2], %s1049_s9  ;;  %s1669_s22 = scalar_lea.hbm %s1718_s7, %s1119_s16 }
  0x1c   : > { %498 = vmatpush1.bf16.msra.mxu0 %v1228_v15  ;;  %539 = vmatpush1.bf16.msra.mxu1 %v1229_v16  ;;  %v1256_v36 = vld [vmem:[%s1714_s3] sm:$0xff]   ;;  %v1261_v42 = vld [vmem:[%s1714_s3 + $0x88] sm:$0xff]   ;;  %v1265_v46 = vld [vmem:[%s1714_s3 + $0x90] sm:$0xff]   ;;  %s986_s18 = sshll.u32 %s269_s17, 4  ;;  %s973_s23 = scalar_lea.sflag [#allocation3], %s267_s8  ;;  %s1671_s18 = int_to_ptr.vmem [resolvable:$true] %s986_s18 }
  0x1d   : > { %499 = vmatprep.subr.bf16.mxu0 %v1230_v17  ;;  %540 = vmatprep.subr.bf16.mxu1 %v1232_v18  ;;  %v1257_v37 = vld [vmem:[%s1714_s3 + $0x80] sm:$0xff]   ;;  %v1266_v47 = vld [vmem:[%s1714_s3 + $0x58] sm:$0xff]   ;;  %v1274_v55 = vld [vmem:[%s1714_s3 + $0x68] sm:$0xff]   ;;  %s1296_s29 = scalar_lea.vmem %s1671_s18, 128  ;;  %s1361_s28 = smov [#allocation2]  }
  0x1e   : > { %v1267_v48 = vld [vmem:[%s1714_s3 + $0xd8] sm:$0xff]   ;;  %v1270_v51 = vld [vmem:[%s1714_s3 + $0x60] sm:$0xff]   ;;  %v1275_v56 = vld [vmem:[%s1714_s3 + $0xe8] sm:$0xff]   ;;  %p1297_p11 = scmp.ne.s32.totalorder %s1671_s18, %s1296_s29  ;;  %s1300_s9 = sshll.u32 %s1361_s28, 4  ;;  %s1301_s9 = int_to_ptr.vmem [resolvable:$false] %s1300_s9 }
  0x1f   : > { %v1268_v49 = vld [vmem:[%s1714_s3 + $0x18] sm:$0xff]   ;;  %v1271_v52 = vld [vmem:[%s1714_s3 + $0xe0] sm:$0xff]   ;;  %v1276_v57 = vld [vmem:[%s1714_s3 + $0x28] sm:$0xff]   ;;  %s1302_s14 = scalar_lea.vmem %s1301_s9, 256  ;;  %p1303_p0 = scmp.lt.s32.totalorder %s1671_s18, %s1301_s9 }
  0x20   : > { %500 = vmatpush1.bf16.msra.mxu0 %v1234_v19  ;;  %541 = vmatpush1.bf16.msra.mxu1 %v1235_v20  ;;  %v1269_v50 = vld [vmem:[%s1714_s3 + $0x98] sm:$0xff]   ;;  %v1272_v53 = vld [vmem:[%s1714_s3 + $0x20] sm:$0xff]   ;;  %v1277_v58 = vld [vmem:[%s1714_s3 + $0xa8] sm:$0xff]   ;;  %p1298_p12 = pnand %p1297_p11, %p1440_p5  ;;  %p1304_p1 = scmp.lt.s32.totalorder %s1302_s14, %s1296_s29 }
  0x21   : > { %501 = vmatprep.subr.bf16.mxu0 %v1236_v21  ;;  %542 = vmatprep.subr.bf16.mxu1 %v1238_v22  ;;  %v1273_v54 = vld [vmem:[%s1714_s3 + $0xa0] sm:$0xff]   ;;  %v1278_v59 = vld [vmem:[%s1714_s3 + $0x70] sm:$0xff]   ;;  %v1282_v63 = vld [vmem:[%s1714_s3 + $0x78] sm:$0xff]  }
  0x22   : > { %v1279_v60 = vld [vmem:[%s1714_s3 + $0xf0] sm:$0xff]   ;;  %v1283_v0 = vld [vmem:[%s1714_s3 + $0xf8] sm:$0xff]   ;;  %v309_v7 = vld [vmem:[%s1713_s2] sm:$0xf]  ;;  %p1299_p13 = pneg %p1298_p12  ;;  %p1305_p2 = por %p1304_p1, %p1303_p0 }
  0x23   : > { %v1280_v61 = vld [vmem:[%s1714_s3 + $0x30] sm:$0xff]   ;;  %v1284_v1 = vld [vmem:[%s1714_s3 + $0x38] sm:$0xff]   ;;  %v314_v10 = vrot.slane %v309_v7, %v313_v5  ;;  %v322_v11 = vrot.slane %v309_v7, %v321_v6  ;;  %v318_v12 = vrot.slane %v309_v7, %v317_v8  ;;  %v326_v13 = vrot.slane %v309_v7, %v325_v9 }
  0x24   : > { %502 = vmatpush1.bf16.msra.mxu0 %v1240_v23  ;;  %543 = vmatpush1.bf16.msra.mxu1 %v1241_v24  ;;  %v1281_v62 = vld [vmem:[%s1714_s3 + $0xb0] sm:$0xff]   ;;  %v1285_v2 = vld [vmem:[%s1714_s3 + $0xb8] sm:$0xff]   ;;  %p1306_p3 = pnand %p1305_p2, %p1299_p13 }
  0x25   : > { %503 = vmatprep.subr.bf16.mxu0 %v1242_v25  ;;  %544 = vmatprep.subr.bf16.mxu1 %v1244_v26 }
  0x28   : > { %504 = vmatpush1.bf16.msra.mxu0 %v1246_v27  ;;  %545 = vmatpush1.bf16.msra.mxu1 %v1247_v28 }
  0x29   : > { %505 = vmatprep.subr.bf16.mxu0 %v1248_v29  ;;  %546 = vmatprep.subr.bf16.mxu1 %v1250_v30 }
  0x2c   : > { %506 = vmatpush1.bf16.msra.mxu0 %v1252_v31  ;;  %547 = vmatpush1.bf16.msra.mxu1 %v1253_v32 }
  0x2d   : > { %1122 = vmatprep.subr.bf16.mxu0 %v1254_v34  ;;  %1144 = vmatprep.subr.bf16.mxu1 %v1255_v35 }
  0x2f   : > { %524 = vmatmul.mubr.bf16.vlgmr.msra.gmra.mrb[0].mxu0 %v276_v38  ;;  %565 = vmatmul.mubr.bf16.vlgmr.msra.gmra.mrb[0].mxu1 %v276_v38 }
  0x30   : > { %1123 = vmatpush3.bf16.msra.mxu0 %v1256_v36  ;;  %1145 = vmatpush3.bf16.msra.mxu1 %v1257_v37 }
  0x31   : > { %1124 = vmatprep.subr.bf16.mxu0 %v1258_v39  ;;  %1146 = vmatprep.subr.bf16.mxu1 %v1259_v40 }
  0x34   : > { %1125 = vmatpush3.bf16.msra.mxu0 %v1260_v41  ;;  %1147 = vmatpush3.bf16.msra.mxu1 %v1261_v42 }
  0x35   : > { %1126 = vmatprep.subr.bf16.mxu0 %v1262_v43  ;;  %1148 = vmatprep.subr.bf16.mxu1 %v1263_v44 }
  0x38   : > { %1127 = vmatpush3.bf16.msra.mxu0 %v1264_v45  ;;  %1149 = vmatpush3.bf16.msra.mxu1 %v1265_v46 }
  0x39   : > { %1128 = vmatprep.subr.bf16.mxu0 %v1266_v47  ;;  %1150 = vmatprep.subr.bf16.mxu1 %v1267_v48 }
  0x3c   : > { %1129 = vmatpush3.bf16.msra.mxu0 %v1268_v49  ;;  %1151 = vmatpush3.bf16.msra.mxu1 %v1269_v50 }
  0x3d   : > { %1130 = vmatprep.subr.bf16.mxu0 %v1270_v51  ;;  %1152 = vmatprep.subr.bf16.mxu1 %v1271_v52 }
  0x40   : > { %1131 = vmatpush3.bf16.msra.mxu0 %v1272_v53  ;;  %1153 = vmatpush3.bf16.msra.mxu1 %v1273_v54  ;;  %v1083_v53 = vld [vmem:[%s1715_s4] ss:$0 sm:$0xff] }
  0x41   : > { %1132 = vmatprep.subr.bf16.mxu0 %v1274_v55  ;;  %1154 = vmatprep.subr.bf16.mxu1 %v1275_v56 }
  0x44   : > { %1133 = vmatpush3.bf16.msra.mxu0 %v1276_v57  ;;  %1155 = vmatpush3.bf16.msra.mxu1 %v1277_v58 }
  0x45   : > { %1134 = vmatprep.subr.bf16.mxu0 %v1278_v59  ;;  %1156 = vmatprep.subr.bf16.mxu1 %v1279_v60 }
  0x48   : > { %1135 = vmatpush3.bf16.msra.mxu0 %v1280_v61  ;;  %1157 = vmatpush3.bf16.msra.mxu1 %v1281_v62 }
  0x49   : > { %1136 = vmatprep.subr.bf16.mxu0 %v1282_v63  ;;  %1158 = vmatprep.subr.bf16.mxu1 %v1283_v0 }
  0x4c   : > { %1137 = vmatpush3.bf16.msra.mxu0 %v1284_v1  ;;  %1159 = vmatpush3.bf16.msra.mxu1 %v1285_v2 }
 0x102   : > { %v525_v14 = vpop.f32.mrb[0].mxu0  ;;  %v566_v15 = vpop.f32.mrb[0].mxu1 }
 0x103   : > { %v526_v16 = vadd.f32 %v525_v14, %v314_v10  ;;  %v567_v17 = vadd.f32 %v566_v15, %v322_v11  ;;  %v527_v18 = vpop.f32.mrb[1].mxu0  ;;  %v568_v19 = vpop.f32.mrb[1].mxu1 }
 0x104   : > { %v528_v20 = vadd.f32 %v527_v18, %v318_v12  ;;  %v569_v21 = vadd.f32 %v568_v19, %v326_v13  ;;  %v529_v22 = vpop.f32.mrb[2].mxu0  ;;  %v570_v23 = vpop.f32.mrb[2].mxu1  ;;  %v1117_v13 = vld [vmem:[%s1717_s6] ss:$0 sm:$0xff] }
 0x105   : > { %v577_v24 = vmul.f32 0.70710677, %v526_v16  ;;  %v579_v25 = vmul.f32 0.70710677, %v567_v17  ;;  %v530_v28 = vpop.f32.mrb[3].mxu0  ;;  %v571_v29 = vpop.f32.mrb[3].mxu1 }
 0x106   : > { %v578_v26 = vmul.f32 0.70710677, %v528_v20  ;;  %v580_v27 = vmul.f32 0.70710677, %v569_v21  ;;  %v573_v35 = vmul.f32 0.5, %v526_v16  ;;  %v575_v38 = vmul.f32 0.5, %v567_v17 }
 0x107   : > { %1286 = verf.f32 %v577_v24  ;;  %v574_v39 = vmul.f32 0.5, %v528_v20  ;;  %v576_v42 = vmul.f32 0.5, %v569_v21 }
 0x108   : > { %1288 = verf.f32 %v579_v25 }
 0x109   : > { %1290 = verf.f32 %v578_v26 }
 0x10a   : > { %1292 = verf.f32 %v580_v27 }
 0x111   : > { %v1287_v30 = vpop.eup %1286 }
 0x112   : > { %v1289_v31 = vpop.eup %1288  ;;  %v585_v32 = vadd.f32 1.0, %v1287_v30 }
 0x113   : > { %v1291_v34 = vpop.eup %1290  ;;  %v587_v36 = vadd.f32 1.0, %v1289_v31 }
 0x114   : > { %v1293_v37 = vpop.eup %1292  ;;  %v586_v40 = vadd.f32 1.0, %v1291_v34  ;;  %v589_v41 = vmul.f32 %v585_v32, %v573_v35 }
 0x115   : > { %v588_v43 = vadd.f32 1.0, %v1293_v37  ;;  %v591_v44 = vmul.f32 %v587_v36, %v575_v38 }
 0x116   : > { %v590_v45 = vmul.f32 %v586_v40, %v574_v39  ;;  %v593_v48 = vpack.c.bf16 %v589_v41, %v589_v41 }
 0x117   : > { %v592_v46 = vmul.f32 %v588_v43, %v576_v42  ;;  %v595_v50 = vpack.c.bf16 %v591_v44, %v591_v44 }
 0x118   : > { %v594_v47 = vpack.c.bf16 %v590_v45, %v590_v45 }
 0x119   : > { %v596_v49 = vpack.c.bf16 %v592_v46, %v592_v46 }
 0x11a   : > { %892 = vmatprep.mubr.bf16.mxu0 %v594_v47 }
 0x11b   : > { %932 = vmatprep.mubr.bf16.mxu1 %v596_v49  ;;  %893 = vmatmul.mubr.bf16.vlgmr.msra.gmra.mrb[4].mxu0 %v593_v48 }
 0x11c   : > { %933 = vmatmul.mubr.bf16.vlgmr.msra.gmra.mrb[4].mxu1 %v595_v50 }
 0x1ee   : > { %v1138_v51 = vpop.f32.mrb[4].mxu0 }
 0x1ef   : > { %v1160_v52 = vpop.f32.mrb[4].mxu1  ;;  %v1139_v54 = vpop.f32.mrb[5].mxu0 }
 0x1f0   : > { %v1140_v55 = vadd.f32 %v1139_v54, %v1138_v51  ;;  %v1161_v56 = vpop.f32.mrb[5].mxu1  ;;  %v1141_v57 = vpop.f32.mrb[6].mxu0 }
 0x1f1   : > { %v1162_v58 = vadd.f32 %v1161_v56, %v1160_v52  ;;  %v1163_v59 = vpop.f32.mrb[6].mxu1  ;;  %v1142_v60 = vpop.f32.mrb[7].mxu0 }
 0x1f2   : > { %v895_v61 = vadd.f32 %v1140_v55, %v1083_v53  ;;  %v1164_v62 = vpop.f32.mrb[7].mxu1 }
 0x1f4   : > { %v935_v63 = vadd.f32 %v1162_v58, %v895_v61 }
 0x1f6   : > { %v940_v0 = vadd.f32 %v935_v63, %v1551_v33  ;;  %v1116_v33 = vld [vmem:[%s1716_s5] ss:$0 sm:$0xff] }
 0x1f8   : > { %941 = vadd.xlane.f32.xlu0 %v940_v0  ;;  %v943_v1 = vmul.f32 %v940_v0, %v940_v0 }
 0x1fc   : > { %944 = vadd.xlane.f32.xlu0 %v943_v1 }
 0x285   : > { %v942_v2 = vpop.xlane.xlu0 %941 }
 0x286   : > { %v946_v3 = vmul.f32 0.0078125, %v942_v2 }
 0x288   : > { %v948_v5 = vmul.f32 %v946_v3, %v946_v3  ;;  %v951_v10 = vsub.f32 %v940_v0, %v946_v3 }
 0x289   : > { %v945_v4 = vpop.xlane.xlu0 %944 }
 0x28a   : > { %v947_v6 = vmul.f32 0.0078125, %v945_v4 }
 0x28c   : > { %v949_v7 = vsub.f32 %v947_v6, %v948_v5 }
 0x28e   : > { %v950_v8 = vmax.f32 %v949_v7, 0.0 }
 0x290   : > { %v952_v9 = vadd.f32 1e-12, %v950_v8 }
 0x292   : > { %1294 = vrsqrt.f32 %v952_v9 }
 0x29c   : > { %v1295_v11 = vpop.eup %1294 }
 0x29d   : > { %v954_v12 = vmul.f32 %v1295_v11, %v951_v10 }
 0x29f   : > { %v962_v14 = vmul.f32 %v1116_v33, %v954_v12 }
 0x2a1   : > { %v970_v15 = vadd.f32 %v1117_v13, %v962_v14 }
 0x2a3   : > { %971 = vst [vmem:[%s269_s17] sm:$0xff] %v970_v15 }
 0x2a4   : > { %1309 = shalt.err (!%p1306_p3)
}
 0x2a5   : > { %s1310_s8 = scalar_lea.hbm %s1669_s22, 128  ;;  %s1314_s20 = scalar_lea.hbm %s1718_s7, 256 }
 0x2a6   : > { %p1311_p4 = scmp.ne.s32.totalorder %s1669_s22, %s1310_s8  ;;  %p1315_p9 = scmp.lt.u32.totalorder %s1669_s22, %s1718_s7 }
 0x2a7   : > { %p1316_p10 = scmp.lt.u32.totalorder %s1314_s20, %s1310_s8  ;;  %p1318_p12 = scmp.lt.u32.totalorder %s1310_s8, %s1669_s22 }
 0x2a8   : > { %p1312_p7 = pnand %p1311_p4, %p1440_p5 }
 0x2a9   : > { %p1317_p11 = por %p1316_p10, %p1315_p9 }
 0x2aa   : > { %p1313_p8 = pneg %p1312_p7 }
 0x2ab   : > { %p1319_p13 = por %p1318_p12, %p1317_p11 }
 0x2ad   : > { %p1320_p0 = pnand %p1319_p13, %p1313_p8 }
 0x2af   : > { %1323 = shalt.err (!%p1320_p0)
}
 0x2b0   : > { %1166 = dma.vmem_to_hbm [thread:$0]  (%p1440_p5), %s1671_s18, 128, %s1669_s22, %s973_s23  }
 0x2b1 PF: > { %p1172_p1 = scmp.ge.s32.totalorder %s1358_s27, 2  ;;  %s998_s19 = sand.u32 1, %s1346_s24  }
 0x2b2   : > { %s999_s21 = scalar_lea.sflag [#allocation3], %s998_s19 }
 0x2b3   : > { %p1169_p2 = pnand %p1172_p1, %p1444_p6 }
 0x2b5   : > { %1341 = dma.done.wait (!%p1169_p2), %s999_s21, 128  }
 0x2b6   : > { %1343 = vsyncadd (!%p1169_p2), %s999_s21, 4294967168  ;;  %p17_p3 = scmp.ge.s32.totalorder %s1427_s30, 4   ;;  %s1721_s24 = smov %s1350_s25 }
 0x2b7   : > { %s1722_s25 = smov %s1354_s26  ;;  %s1723_s26 = smov %s1438_s10 }
 0x2b8   : > { %s1724_s27 = smov %s1427_s30  ;;  %19 = sbr.rel (!%p17_p3) target bundleno = 3 (0x3), region = 83 }
 0x2bf   :  { %1004 = vsyncpa [#allocation3], 1 }
 0x2c0   :  { %1006 = vsyncpa [#allocation3 + $0x1], 1 }

// kernel: bert_fcn_forward.1
= control target key start
LH: loop header
LB: loop body
LE: loop exit
PB: predicated region body
PF: predicated region fallthrough
CT: control target
= control target key end

     0   :  { %12 = vsyncpa [#allocation3], 0  ;;  %s1711_s0 = inlined_call_operand.vmem [shape: f32[16,128], index: 0, kind: input, shape index: {}]   ;;  %s1712_s1 = inlined_call_operand.vmem [shape: bf16[128,512], index: 1, kind: input, shape index: {}]   ;;  %s1713_s2 = inlined_call_operand.vmem [shape: f32[1,512], index: 2, kind: input, shape index: {}]   ;;  %s1714_s3 = inlined_call_operand.vmem [shape: bf16[512,128], index: 3, kind: input, shape index: {}]   ;;  %s1715_s4 = inlined_call_operand.vmem [shape: f32[1,128], index: 4, kind: input, shape index: {}]   ;;  %s1716_s5 = inlined_call_operand.vmem [shape: f32[1,128], index: 5, kind: input, shape index: {}]   ;;  %s1717_s6 = inlined_call_operand.vmem [shape: f32[1,128], index: 6, kind: input, shape index: {}]   ;;  %s1718_s7 = inlined_call_operand.hbm [shape: f32[16,128], index: 7, kind: output, shape index: {}]  }
   0x1   :  { %14 = vsyncpa [#allocation3 + $0x1], 0  ;;  %s1402_s24 = smov 0   ;;  %s1404_s25 = smov 0  }
   0x2   :  { %s1406_s26 = smov 0   ;;  %s1408_s27 = smov 0  }
   0x3 LB: > { %s1423_s28 = sadd.s32 4294967295, %s1358_s27   ;;  %s1045_s29 = sadd.s32 4294967294, %s1358_s27   ;;  %s1358_s27 = sphi %s1408_s27, %s1724_s27   ;;  %s1354_s26 = sphi %s1406_s26, %s1723_s26   ;;  %s1350_s25 = sphi %s1404_s25, %s1722_s25   ;;  %s1346_s24 = sphi %s1402_s24, %s1721_s24  }
   0x4   : > { %s1427_s30 = sadd.s32 1, %s1358_s27   ;;  %s179_s8 = sadd.s32 1, %s1354_s26 }
   0x5   : > { %s176_s9 = ssub.s32 %s1358_s27, %s1427_s30  ;;  %p189_p0 = scmp.ne.s32.totalorder %s1354_s26, %s1350_s25 }
   0x6   : > { %p177_p1 = scmp.eq.s32.totalorder %s176_s9, 0  ;;  %p190_p2 = scmp.eq.s32.totalorder %s1423_s28, 1 }
   0x7   : > { %p195_p3 = scmp.ne.s32.totalorder %s1350_s25, %s1346_s24  ;;  %p196_p4 = scmp.eq.s32.totalorder %s1045_s29, 1 }
   0x8   : > { %s1438_s10 = scalar_select %p177_p1, %s1354_s26, %s179_s8  }
   0x9   : > { %p1440_p5 = por %p190_p2, %p189_p0  ;;  %p1444_p6 = por %p196_p4, %p195_p3 }
   0xa   : > { %p1048_p7 = scmp.ge.s32.totalorder %s1358_s27, 1  ;;  %p239_p8 = scmp.lt.s32.totalorder %s1358_s27, 3 }
   0xc   : > { %p240_p9 = pnand %p1048_p7, %p239_p8 }
   0xd   : > { %v1206_v0 = vld [vmem:[%s1712_s1 + $0x4] ss:$16 sps:$4 sm:$0xff] (!%p240_p9)   ;;  %v1208_v1 = vld [vmem:[%s1712_s1 + $0xc] ss:$16 sps:$4 sm:$0xff] (!%p240_p9)   ;;  %v1360_v2 = vmov (!%p240_p9), 0   ;;  %p270_p10 = scmp.lt.s32.totalorder (!%p240_p9), %s1423_s28, 1 }
   0xe   : > { %243 = sbr.rel (%p240_p9) target bundleno = 689 (0x2b1), region = 48  ;;  %523 = vmatprep.mubr.bf16.mxu0 (!%p240_p9), %v1360_v2  ;;  %564 = vmatprep.mubr.bf16.mxu1 (!%p240_p9), %v1360_v2  ;;  %v1210_v3 = vld [vmem:[%s1712_s1] ss:$16 sps:$4 sm:$0xff] (!%p240_p9)   ;;  %v1211_v4 = vld [vmem:[%s1712_s1 + $0x8] ss:$16 sps:$4 sm:$0xff] (!%p240_p9)   ;;  %s267_s8 = sand.u32 (!%p240_p9), 1, %s1350_s25  }
   0xf   : > { %491 = vmatprep.subr.bf16.mxu0 (!%p240_p9), %v1206_v0  ;;  %532 = vmatprep.subr.bf16.mxu1 (!%p240_p9), %v1208_v1  ;;  %v1212_v5 = vld [vmem:[%s1712_s1 + $0x24] ss:$16 sps:$4 sm:$0xff] (!%p240_p9)   ;;  %v1214_v6 = vld [vmem:[%s1712_s1 + $0x2c] ss:$16 sps:$4 sm:$0xff] (!%p240_p9)   ;;  %v1216_v7 = vld [vmem:[%s1712_s1 + $0x20] ss:$16 sps:$4 sm:$0xff] (!%p240_p9)  }
  0x10   : > { %492 = vmatpush1.bf16.msra.mxu0 (!%p240_p9), %v1210_v3  ;;  %533 = vmatpush1.bf16.msra.mxu1 (!%p240_p9), %v1211_v4  ;;  %v1217_v8 = vld [vmem:[%s1712_s1 + $0x28] ss:$16 sps:$4 sm:$0xff] (!%p240_p9)   ;;  %v1218_v9 = vld [vmem:[%s1712_s1 + $0x44] ss:$16 sps:$4 sm:$0xff] (!%p240_p9)   ;;  %v1220_v10 = vld [vmem:[%s1712_s1 + $0x4c] ss:$16 sps:$4 sm:$0xff] (!%p240_p9)   ;;  %v311_v3 = vlaneseq (!%p240_p9) }
  0x11   : > { %493 = vmatprep.subr.bf16.mxu0 (!%p240_p9), %v1212_v5  ;;  %534 = vmatprep.subr.bf16.mxu1 (!%p240_p9), %v1214_v6  ;;  %v1222_v11 = vld [vmem:[%s1712_s1 + $0x40] ss:$16 sps:$4 sm:$0xff] (!%p240_p9)   ;;  %v1223_v12 = vld [vmem:[%s1712_s1 + $0x48] ss:$16 sps:$4 sm:$0xff] (!%p240_p9)   ;;  %v1224_v13 = vld [vmem:[%s1712_s1 + $0x64] ss:$16 sps:$4 sm:$0xff] (!%p240_p9)  }
  0x12   : > { %v1226_v14 = vld [vmem:[%s1712_s1 + $0x6c] ss:$16 sps:$4 sm:$0xff] (!%p240_p9)   ;;  %v1228_v15 = vld [vmem:[%s1712_s1 + $0x60] ss:$16 sps:$4 sm:$0xff] (!%p240_p9)   ;;  %v1229_v16 = vld [vmem:[%s1712_s1 + $0x68] ss:$16 sps:$4 sm:$0xff] (!%p240_p9)  }
  0x13   : > { %v1230_v17 = vld [vmem:[%s1712_s1 + $0x84] ss:$16 sps:$4 sm:$0xff] (!%p240_p9)   ;;  %v1232_v18 = vld [vmem:[%s1712_s1 + $0x8c] ss:$16 sps:$4 sm:$0xff] (!%p240_p9)   ;;  %v1234_v19 = vld [vmem:[%s1712_s1 + $0x80] ss:$16 sps:$4 sm:$0xff] (!%p240_p9)  }
  0x14   : > { %494 = vmatpush1.bf16.msra.mxu0 (!%p240_p9), %v1216_v7  ;;  %535 = vmatpush1.bf16.msra.mxu1 (!%p240_p9), %v1217_v8  ;;  %v1235_v20 = vld [vmem:[%s1712_s1 + $0x88] ss:$16 sps:$4 sm:$0xff] (!%p240_p9)   ;;  %v1236_v21 = vld [vmem:[%s1712_s1 + $0xa4] ss:$16 sps:$4 sm:$0xff] (!%p240_p9)   ;;  %v1238_v22 = vld [vmem:[%s1712_s1 + $0xac] ss:$16 sps:$4 sm:$0xff] (!%p240_p9)  }
  0x15   : > { %495 = vmatprep.subr.bf16.mxu0 %v1218_v9  ;;  %536 = vmatprep.subr.bf16.mxu1 %v1220_v10  ;;  %s271_s13 = scalar_select %p270_p10, %s1423_s28, 1  ;;  %v1240_v23 = vld [vmem:[%s1712_s1 + $0xa0] ss:$16 sps:$4 sm:$0xff]   ;;  %v1241_v24 = vld [vmem:[%s1712_s1 + $0xa8] ss:$16 sps:$4 sm:$0xff]   ;;  %v312_v4 = vshrl.u32 %v311_v3, 7 }
  0x16   : > { %v1242_v25 = vld [vmem:[%s1712_s1 + $0xc4] ss:$16 sps:$4 sm:$0xff]   ;;  %v1244_v26 = vld [vmem:[%s1712_s1 + $0xcc] ss:$16 sps:$4 sm:$0xff]   ;;  %v1246_v27 = vld [vmem:[%s1712_s1 + $0xc0] ss:$16 sps:$4 sm:$0xff]  }
  0x17   : > { %s1050_s20 = sshll.u32 %s271_s13, 3  ;;  %v1247_v28 = vld [vmem:[%s1712_s1 + $0xc8] ss:$16 sps:$4 sm:$0xff]   ;;  %v1248_v29 = vld [vmem:[%s1712_s1 + $0xe4] ss:$16 sps:$4 sm:$0xff]   ;;  %v313_v5 = vsub.s32 0, %v312_v4 }
  0x18   : > { %496 = vmatpush1.bf16.msra.mxu0 %v1222_v11  ;;  %537 = vmatpush1.bf16.msra.mxu1 %v1223_v12  ;;  %v1250_v30 = vld [vmem:[%s1712_s1 + $0xec] ss:$16 sps:$4 sm:$0xff]   ;;  %s273_s22 = scalar_lea.vmem %s1711_s0, %s1050_s20  ;;  %v1252_v31 = vld [vmem:[%s1712_s1 + $0xe0] ss:$16 sps:$4 sm:$0xff]   ;;  %v1253_v32 = vld [vmem:[%s1712_s1 + $0xe8] ss:$16 sps:$4 sm:$0xff]  }
  0x19   : > { %497 = vmatprep.subr.bf16.mxu0 %v1224_v13  ;;  %538 = vmatprep.subr.bf16.mxu1 %v1226_v14  ;;  %v1551_v33 = vld [vmem:[%s273_s22] sm:$0xff]  ;;  %v1258_v39 = vld [vmem:[%s1714_s3 + $0x48] sm:$0xff]   ;;  %v1262_v43 = vld [vmem:[%s1714_s3 + $0x50] sm:$0xff]   ;;  %v321_v6 = vsub.s32 2, %v312_v4  ;;  %v317_v8 = vsub.s32 1, %v312_v4  ;;  %v325_v9 = vsub.s32 3, %v312_v4 }
  0x1a   : > { %v1254_v34 = vld [vmem:[%s1714_s3 + $0x40] sm:$0xff]   ;;  %v276_v38 = vpack.c.bf16 %v1551_v33, %v1551_v33  ;;  %v1259_v40 = vld [vmem:[%s1714_s3 + $0xc8] sm:$0xff]   ;;  %v1263_v44 = vld [vmem:[%s1714_s3 + $0xd0] sm:$0xff]   ;;  %s1049_s9 = sshll.u32 %s267_s8, 3  ;;  %s1119_s16 = sshll.u32 %s1423_s28, 7 }
  0x1b   : > { %v1255_v35 = vld [vmem:[%s1714_s3 + $0xc0] sm:$0xff]   ;;  %v1260_v41 = vld [vmem:[%s1714_s3 + $0x8] sm:$0xff]   ;;  %v1264_v45 = vld [vmem:[%s1714_s3 + $0x10] sm:$0xff]   ;;  %s269_s17 = scalar_lea.vmem [#allocation2], %s1049_s9  ;;  %s1669_s22 = scalar_lea.hbm %s1718_s7, %s1119_s16 }
  0x1c   : > { %498 = vmatpush1.bf16.msra.mxu0 %v1228_v15  ;;  %539 = vmatpush1.bf16.msra.mxu1 %v1229_v16  ;;  %v1256_v36 = vld [vmem:[%s1714_s3] sm:$0xff]   ;;  %v1261_v42 = vld [vmem:[%s1714_s3 + $0x88] sm:$0xff]   ;;  %v1265_v46 = vld [vmem:[%s1714_s3 + $0x90] sm:$0xff]   ;;  %s986_s18 = sshll.u32 %s269_s17, 4  ;;  %s973_s23 = scalar_lea.sflag [#allocation3], %s267_s8  ;;  %s1671_s18 = int_to_ptr.vmem [resolvable:$true] %s986_s18 }
  0x1d   : > { %499 = vmatprep.subr.bf16.mxu0 %v1230_v17  ;;  %540 = vmatprep.subr.bf16.mxu1 %v1232_v18  ;;  %v1257_v37 = vld [vmem:[%s1714_s3 + $0x80] sm:$0xff]   ;;  %v1266_v47 = vld [vmem:[%s1714_s3 + $0x58] sm:$0xff]   ;;  %v1274_v55 = vld [vmem:[%s1714_s3 + $0x68] sm:$0xff]   ;;  %s1296_s29 = scalar_lea.vmem %s1671_s18, 128  ;;  %s1361_s28 = smov [#allocation2]  }
  0x1e   : > { %v1267_v48 = vld [vmem:[%s1714_s3 + $0xd8] sm:$0xff]   ;;  %v1270_v51 = vld [vmem:[%s1714_s3 + $0x60] sm:$0xff]   ;;  %v1275_v56 = vld [vmem:[%s1714_s3 + $0xe8] sm:$0xff]   ;;  %p1297_p11 = scmp.ne.s32.totalorder %s1671_s18, %s1296_s29  ;;  %s1300_s9 = sshll.u32 %s1361_s28, 4  ;;  %s1301_s9 = int_to_ptr.vmem [resolvable:$false] %s1300_s9 }
  0x1f   : > { %v1268_v49 = vld [vmem:[%s1714_s3 + $0x18] sm:$0xff]   ;;  %v1271_v52 = vld [vmem:[%s1714_s3 + $0xe0] sm:$0xff]   ;;  %v1276_v57 = vld [vmem:[%s1714_s3 + $0x28] sm:$0xff]   ;;  %s1302_s14 = scalar_lea.vmem %s1301_s9, 256  ;;  %p1303_p0 = scmp.lt.s32.totalorder %s1671_s18, %s1301_s9 }
  0x20   : > { %500 = vmatpush1.bf16.msra.mxu0 %v1234_v19  ;;  %541 = vmatpush1.bf16.msra.mxu1 %v1235_v20  ;;  %v1269_v50 = vld [vmem:[%s1714_s3 + $0x98] sm:$0xff]   ;;  %v1272_v53 = vld [vmem:[%s1714_s3 + $0x20] sm:$0xff]   ;;  %v1277_v58 = vld [vmem:[%s1714_s3 + $0xa8] sm:$0xff]   ;;  %p1298_p12 = pnand %p1297_p11, %p1440_p5  ;;  %p1304_p1 = scmp.lt.s32.totalorder %s1302_s14, %s1296_s29 }
  0x21   : > { %501 = vmatprep.subr.bf16.mxu0 %v1236_v21  ;;  %542 = vmatprep.subr.bf16.mxu1 %v1238_v22  ;;  %v1273_v54 = vld [vmem:[%s1714_s3 + $0xa0] sm:$0xff]   ;;  %v1278_v59 = vld [vmem:[%s1714_s3 + $0x70] sm:$0xff]   ;;  %v1282_v63 = vld [vmem:[%s1714_s3 + $0x78] sm:$0xff]  }
  0x22   : > { %v1279_v60 = vld [vmem:[%s1714_s3 + $0xf0] sm:$0xff]   ;;  %v1283_v0 = vld [vmem:[%s1714_s3 + $0xf8] sm:$0xff]   ;;  %v309_v7 = vld [vmem:[%s1713_s2] sm:$0xf]  ;;  %p1299_p13 = pneg %p1298_p12  ;;  %p1305_p2 = por %p1304_p1, %p1303_p0 }
  0x23   : > { %v1280_v61 = vld [vmem:[%s1714_s3 + $0x30] sm:$0xff]   ;;  %v1284_v1 = vld [vmem:[%s1714_s3 + $0x38] sm:$0xff]   ;;  %v314_v10 = vrot.slane %v309_v7, %v313_v5  ;;  %v322_v11 = vrot.slane %v309_v7, %v321_v6  ;;  %v318_v12 = vrot.slane %v309_v7, %v317_v8  ;;  %v326_v13 = vrot.slane %v309_v7, %v325_v9 }
  0x24   : > { %502 = vmatpush1.bf16.msra.mxu0 %v1240_v23  ;;  %543 = vmatpush1.bf16.msra.mxu1 %v1241_v24  ;;  %v1281_v62 = vld [vmem:[%s1714_s3 + $0xb0] sm:$0xff]   ;;  %v1285_v2 = vld [vmem:[%s1714_s3 + $0xb8] sm:$0xff]   ;;  %p1306_p3 = pnand %p1305_p2, %p1299_p13 }
  0x25   : > { %503 = vmatprep.subr.bf16.mxu0 %v1242_v25  ;;  %544 = vmatprep.subr.bf16.mxu1 %v1244_v26 }
  0x28   : > { %504 = vmatpush1.bf16.msra.mxu0 %v1246_v27  ;;  %545 = vmatpush1.bf16.msra.mxu1 %v1247_v28 }
  0x29   : > { %505 = vmatprep.subr.bf16.mxu0 %v1248_v29  ;;  %546 = vmatprep.subr.bf16.mxu1 %v1250_v30 }
  0x2c   : > { %506 = vmatpush1.bf16.msra.mxu0 %v1252_v31  ;;  %547 = vmatpush1.bf16.msra.mxu1 %v1253_v32 }
  0x2d   : > { %1122 = vmatprep.subr.bf16.mxu0 %v1254_v34  ;;  %1144 = vmatprep.subr.bf16.mxu1 %v1255_v35 }
  0x2f   : > { %524 = vmatmul.mubr.bf16.vlgmr.msra.gmra.mrb[0].mxu0 %v276_v38  ;;  %565 = vmatmul.mubr.bf16.vlgmr.msra.gmra.mrb[0].mxu1 %v276_v38 }
  0x30   : > { %1123 = vmatpush3.bf16.msra.mxu0 %v1256_v36  ;;  %1145 = vmatpush3.bf16.msra.mxu1 %v1257_v37 }
  0x31   : > { %1124 = vmatprep.subr.bf16.mxu0 %v1258_v39  ;;  %1146 = vmatprep.subr.bf16.mxu1 %v1259_v40 }
  0x34   : > { %1125 = vmatpush3.bf16.msra.mxu0 %v1260_v41  ;;  %1147 = vmatpush3.bf16.msra.mxu1 %v1261_v42 }
  0x35   : > { %1126 = vmatprep.subr.bf16.mxu0 %v1262_v43  ;;  %1148 = vmatprep.subr.bf16.mxu1 %v1263_v44 }
  0x38   : > { %1127 = vmatpush3.bf16.msra.mxu0 %v1264_v45  ;;  %1149 = vmatpush3.bf16.msra.mxu1 %v1265_v46 }
  0x39   : > { %1128 = vmatprep.subr.bf16.mxu0 %v1266_v47  ;;  %1150 = vmatprep.subr.bf16.mxu1 %v1267_v48 }
  0x3c   : > { %1129 = vmatpush3.bf16.msra.mxu0 %v1268_v49  ;;  %1151 = vmatpush3.bf16.msra.mxu1 %v1269_v50 }
  0x3d   : > { %1130 = vmatprep.subr.bf16.mxu0 %v1270_v51  ;;  %1152 = vmatprep.subr.bf16.mxu1 %v1271_v52 }
  0x40   : > { %1131 = vmatpush3.bf16.msra.mxu0 %v1272_v53  ;;  %1153 = vmatpush3.bf16.msra.mxu1 %v1273_v54  ;;  %v1083_v53 = vld [vmem:[%s1715_s4] ss:$0 sm:$0xff] }
  0x41   : > { %1132 = vmatprep.subr.bf16.mxu0 %v1274_v55  ;;  %1154 = vmatprep.subr.bf16.mxu1 %v1275_v56 }
  0x44   : > { %1133 = vmatpush3.bf16.msra.mxu0 %v1276_v57  ;;  %1155 = vmatpush3.bf16.msra.mxu1 %v1277_v58 }
  0x45   : > { %1134 = vmatprep.subr.bf16.mxu0 %v1278_v59  ;;  %1156 = vmatprep.subr.bf16.mxu1 %v1279_v60 }
  0x48   : > { %1135 = vmatpush3.bf16.msra.mxu0 %v1280_v61  ;;  %1157 = vmatpush3.bf16.msra.mxu1 %v1281_v62 }
  0x49   : > { %1136 = vmatprep.subr.bf16.mxu0 %v1282_v63  ;;  %1158 = vmatprep.subr.bf16.mxu1 %v1283_v0 }
  0x4c   : > { %1137 = vmatpush3.bf16.msra.mxu0 %v1284_v1  ;;  %1159 = vmatpush3.bf16.msra.mxu1 %v1285_v2 }
 0x102   : > { %v525_v14 = vpop.f32.mrb[0].mxu0  ;;  %v566_v15 = vpop.f32.mrb[0].mxu1 }
 0x103   : > { %v526_v16 = vadd.f32 %v525_v14, %v314_v10  ;;  %v567_v17 = vadd.f32 %v566_v15, %v322_v11  ;;  %v527_v18 = vpop.f32.mrb[1].mxu0  ;;  %v568_v19 = vpop.f32.mrb[1].mxu1 }
 0x104   : > { %v528_v20 = vadd.f32 %v527_v18, %v318_v12  ;;  %v569_v21 = vadd.f32 %v568_v19, %v326_v13  ;;  %v529_v22 = vpop.f32.mrb[2].mxu0  ;;  %v570_v23 = vpop.f32.mrb[2].mxu1  ;;  %v1117_v13 = vld [vmem:[%s1717_s6] ss:$0 sm:$0xff] }
 0x105   : > { %v577_v24 = vmul.f32 0.70710677, %v526_v16  ;;  %v579_v25 = vmul.f32 0.70710677, %v567_v17  ;;  %v530_v28 = vpop.f32.mrb[3].mxu0  ;;  %v571_v29 = vpop.f32.mrb[3].mxu1 }
 0x106   : > { %v578_v26 = vmul.f32 0.70710677, %v528_v20  ;;  %v580_v27 = vmul.f32 0.70710677, %v569_v21  ;;  %v573_v35 = vmul.f32 0.5, %v526_v16  ;;  %v575_v38 = vmul.f32 0.5, %v567_v17 }
 0x107   : > { %1286 = verf.f32 %v577_v24  ;;  %v574_v39 = vmul.f32 0.5, %v528_v20  ;;  %v576_v42 = vmul.f32 0.5, %v569_v21 }
 0x108   : > { %1288 = verf.f32 %v579_v25 }
 0x109   : > { %1290 = verf.f32 %v578_v26 }
 0x10a   : > { %1292 = verf.f32 %v580_v27 }
 0x111   : > { %v1287_v30 = vpop.eup %1286 }
 0x112   : > { %v1289_v31 = vpop.eup %1288  ;;  %v585_v32 = vadd.f32 1.0, %v1287_v30 }
 0x113   : > { %v1291_v34 = vpop.eup %1290  ;;  %v587_v36 = vadd.f32 1.0, %v1289_v31 }
 0x114   : > { %v1293_v37 = vpop.eup %1292  ;;  %v586_v40 = vadd.f32 1.0, %v1291_v34  ;;  %v589_v41 = vmul.f32 %v585_v32, %v573_v35 }
 0x115   : > { %v588_v43 = vadd.f32 1.0, %v1293_v37  ;;  %v591_v44 = vmul.f32 %v587_v36, %v575_v38 }
 0x116   : > { %v590_v45 = vmul.f32 %v586_v40, %v574_v39  ;;  %v593_v48 = vpack.c.bf16 %v589_v41, %v589_v41 }
 0x117   : > { %v592_v46 = vmul.f32 %v588_v43, %v576_v42  ;;  %v595_v50 = vpack.c.bf16 %v591_v44, %v591_v44 }
 0x118   : > { %v594_v47 = vpack.c.bf16 %v590_v45, %v590_v45 }
 0x119   : > { %v596_v49 = vpack.c.bf16 %v592_v46, %v592_v46 }
 0x11a   : > { %892 = vmatprep.mubr.bf16.mxu0 %v594_v47 }
 0x11b   : > { %932 = vmatprep.mubr.bf16.mxu1 %v596_v49  ;;  %893 = vmatmul.mubr.bf16.vlgmr.msra.gmra.mrb[4].mxu0 %v593_v48 }
 0x11c   : > { %933 = vmatmul.mubr.bf16.vlgmr.msra.gmra.mrb[4].mxu1 %v595_v50 }
 0x1ee   : > { %v1138_v51 = vpop.f32.mrb[4].mxu0 }
 0x1ef   : > { %v1160_v52 = vpop.f32.mrb[4].mxu1  ;;  %v1139_v54 = vpop.f32.mrb[5].mxu0 }
 0x1f0   : > { %v1140_v55 = vadd.f32 %v1139_v54, %v1138_v51  ;;  %v1161_v56 = vpop.f32.mrb[5].mxu1  ;;  %v1141_v57 = vpop.f32.mrb[6].mxu0 }
 0x1f1   : > { %v1162_v58 = vadd.f32 %v1161_v56, %v1160_v52  ;;  %v1163_v59 = vpop.f32.mrb[6].mxu1  ;;  %v1142_v60 = vpop.f32.mrb[7].mxu0 }
 0x1f2   : > { %v895_v61 = vadd.f32 %v1140_v55, %v1083_v53  ;;  %v1164_v62 = vpop.f32.mrb[7].mxu1 }
 0x1f4   : > { %v935_v63 = vadd.f32 %v1162_v58, %v895_v61 }
 0x1f6   : > { %v940_v0 = vadd.f32 %v935_v63, %v1551_v33  ;;  %v1116_v33 = vld [vmem:[%s1716_s5] ss:$0 sm:$0xff] }
 0x1f8   : > { %941 = vadd.xlane.f32.xlu0 %v940_v0  ;;  %v943_v1 = vmul.f32 %v940_v0, %v940_v0 }
 0x1fc   : > { %944 = vadd.xlane.f32.xlu0 %v943_v1 }
 0x285   : > { %v942_v2 = vpop.xlane.xlu0 %941 }
 0x286   : > { %v946_v3 = vmul.f32 0.0078125, %v942_v2 }
 0x288   : > { %v948_v5 = vmul.f32 %v946_v3, %v946_v3  ;;  %v951_v10 = vsub.f32 %v940_v0, %v946_v3 }
 0x289   : > { %v945_v4 = vpop.xlane.xlu0 %944 }
 0x28a   : > { %v947_v6 = vmul.f32 0.0078125, %v945_v4 }
 0x28c   : > { %v949_v7 = vsub.f32 %v947_v6, %v948_v5 }
 0x28e   : > { %v950_v8 = vmax.f32 %v949_v7, 0.0 }
 0x290   : > { %v952_v9 = vadd.f32 1e-12, %v950_v8 }
 0x292   : > { %1294 = vrsqrt.f32 %v952_v9 }
 0x29c   : > { %v1295_v11 = vpop.eup %1294 }
 0x29d   : > { %v954_v12 = vmul.f32 %v1295_v11, %v951_v10 }
 0x29f   : > { %v962_v14 = vmul.f32 %v1116_v33, %v954_v12 }
 0x2a1   : > { %v970_v15 = vadd.f32 %v1117_v13, %v962_v14 }
 0x2a3   : > { %971 = vst [vmem:[%s269_s17] sm:$0xff] %v970_v15 }
 0x2a4   : > { %1309 = shalt.err (!%p1306_p3)
}
 0x2a5   : > { %s1310_s8 = scalar_lea.hbm %s1669_s22, 128  ;;  %s1314_s20 = scalar_lea.hbm %s1718_s7, 256 }
 0x2a6   : > { %p1311_p4 = scmp.ne.s32.totalorder %s1669_s22, %s1310_s8  ;;  %p1315_p9 = scmp.lt.u32.totalorder %s1669_s22, %s1718_s7 }
 0x2a7   : > { %p1316_p10 = scmp.lt.u32.totalorder %s1314_s20, %s1310_s8  ;;  %p1318_p12 = scmp.lt.u32.totalorder %s1310_s8, %s1669_s22 }
 0x2a8   : > { %p1312_p7 = pnand %p1311_p4, %p1440_p5 }
 0x2a9   : > { %p1317_p11 = por %p1316_p10, %p1315_p9 }
 0x2aa   : > { %p1313_p8 = pneg %p1312_p7 }
 0x2ab   : > { %p1319_p13 = por %p1318_p12, %p1317_p11 }
 0x2ad   : > { %p1320_p0 = pnand %p1319_p13, %p1313_p8 }
 0x2af   : > { %1323 = shalt.err (!%p1320_p0)
}
 0x2b0   : > { %1166 = dma.vmem_to_hbm [thread:$0]  (%p1440_p5), %s1671_s18, 128, %s1669_s22, %s973_s23  }
 0x2b1 PF: > { %p1172_p1 = scmp.ge.s32.totalorder %s1358_s27, 2  ;;  %s998_s19 = sand.u32 1, %s1346_s24  }
 0x2b2   : > { %s999_s21 = scalar_lea.sflag [#allocation3], %s998_s19 }
 0x2b3   : > { %p1169_p2 = pnand %p1172_p1, %p1444_p6 }
 0x2b5   : > { %1341 = dma.done.wait (!%p1169_p2), %s999_s21, 128  }
 0x2b6   : > { %1343 = vsyncadd (!%p1169_p2), %s999_s21, 4294967168  ;;  %p17_p3 = scmp.ge.s32.totalorder %s1427_s30, 4   ;;  %s1721_s24 = smov %s1350_s25 }
 0x2b7   : > { %s1722_s25 = smov %s1354_s26  ;;  %s1723_s26 = smov %s1438_s10 }
 0x2b8   : > { %s1724_s27 = smov %s1427_s30  ;;  %19 = sbr.rel (!%p17_p3) target bundleno = 3 (0x3), region = 83 }
 0x2bf   :  { %1004 = vsyncpa [#allocation3], 1 }
 0x2c0   :  { %1006 = vsyncpa [#allocation3 + $0x1], 1 }

</bundles_post_ra>
